<compile_context>
chip_gen: v5e
topology: v5e:2x2
jax: 0.10.0
libtpu: 0.0.40
codegen_flags: <defaults>
</compile_context>

<pallas_src>
import math

import jax
import jax.numpy as jnp
from jax.experimental import pallas as pl
from jax.experimental.pallas import tpu as pltpu

NUM_TRUE_SHOWER = 6   # number of regression targets (module's output dim)

# Batch tile: big enough that the per-grid-step x block (~TB*D*4 bytes) is
# >= ~1 MiB and the ~0.35 us/step overhead is DMA-hidden.
#   v5e: 4096-8192, v6e: 8192, v7x: 16384-32768 (keep the grid even for 2 TCs).
BATCH_TILE = 8192


def _linear_kernel(x_ref, wt_ref, b_ref, o_ref):
    # x_ref: (TB, D)   wt_ref: (D, O)   b_ref: (1, O)   o_ref: (TB, O)
    acc = jnp.dot(x_ref[...], wt_ref[...], preferred_element_type=jnp.float32)
    o_ref[...] = (acc + b_ref[...]).astype(o_ref.dtype)


def linear_regression_forward(x, weight, bias, *,
                              batch_tile=BATCH_TILE, xla_below_rows=0):
    """y = x @ weight.T + bias   (weight: (O, D), bias: (O,)) — like nn.Linear.

    `xla_below_rows`: if B is below this threshold, skip Pallas entirely and
    let XLA fuse the op (recommended ~4096 in production; 0 here so the demo
    runs the kernel).
    """
    B, D = x.shape
    O = weight.shape[0]

    if B < xla_below_rows:
        return x @ weight.T + bias

    # One-time, trivially small parameter prep (no padding needed):
    w_t = weight.T          # (D, O)
    b2 = bias.reshape(1, O)

    if B > batch_tile:
        tb = batch_tile
        grid = (pl.cdiv(B, tb),)      # partial last block is masked by Pallas
    else:
        tb = B                        # full-extent block: always (8,128)-legal
        grid = (1,)

    return pl.pallas_call(
        _linear_kernel,
        out_shape=jax.ShapeDtypeStruct((B, O), x.dtype),
        grid=grid,
        in_specs=[
            pl.BlockSpec((tb, D), lambda i: (i, 0)),   # x: tiled over batch
            pl.BlockSpec((D, O), lambda i: (0, 0)),    # W^T: resident
            pl.BlockSpec((1, O), lambda i: (0, 0)),    # bias: resident
        ],
        out_specs=pl.BlockSpec((tb, O), lambda i: (i, 0)),
        compiler_params=pltpu.CompilerParams(
            dimension_semantics=("parallel",),
        ),
    )(x, w_t, b2)


if __name__ == "__main__":
    key = jax.random.PRNGKey(0)
    k_x, k_w, k_b = jax.random.split(key, 3)

    batch = 8
    input_size = 32

    # Deterministic PyTorch-style init: U(-1/sqrt(in), 1/sqrt(in))
    bound = 1.0 / math.sqrt(input_size)
    weight = jax.random.uniform(
        k_w, (NUM_TRUE_SHOWER, input_size), jnp.float32, -bound, bound
    )
    bias = jax.random.uniform(
        k_b, (NUM_TRUE_SHOWER,), jnp.float32, -bound, bound
    )

    x = jax.random.normal(k_x, (batch, input_size), jnp.float32)

    y = linear_regression_forward(x, weight, bias)
    jax.block_until_ready(y)

    # Reference check against plain JAX
    y_ref = x @ weight.T + bias
    assert y.shape == (batch, NUM_TRUE_SHOWER)
    assert jnp.allclose(y, y_ref, atol=1e-5, rtol=1e-5)

    print("KERNEL_OK")
</pallas_src>

<mosaic_0001>
module attributes {stable_mosaic.version = 11 : i64} {
  func.func @_linear_kernel(%arg0: i32, %arg1: memref<8x32xf32, #tpu.memory_space<vmem>>, %arg2: memref<32x6xf32, #tpu.memory_space<vmem>>, %arg3: memref<1x6xf32, #tpu.memory_space<vmem>>, %arg4: memref<8x6xf32, #tpu.memory_space<vmem>>) attributes {dimension_semantics = [#tpu.dimension_semantics<parallel>], iteration_bounds = array<i64: 1>, scalar_prefetch = 0 : i64, scratch_operands = 0 : i64, tpu.core_type = #tpu.core_type<tc>, window_params = [{transform_indices = @transform_0, window_bounds = array<i64: 8, 32>}, {pipeline_mode = #tpu.pipeline_mode<synchronous>, transform_indices = @transform_1, window_bounds = array<i64: 32, 6>}, {pipeline_mode = #tpu.pipeline_mode<synchronous>, transform_indices = @transform_2, window_bounds = array<i64: 1, 6>}, {transform_indices = @transform_3, window_bounds = array<i64: 8, 6>}]} {
    %c0 = arith.constant 0 : index
    %c0_0 = arith.constant 0 : index
    %0 = vector.load %arg1[%c0, %c0_0] : memref<8x32xf32, #tpu.memory_space<vmem>>, vector<8x32xf32>
    %c0_1 = arith.constant 0 : index
    %c0_2 = arith.constant 0 : index
    %1 = vector.load %arg2[%c0_1, %c0_2] : memref<32x6xf32, #tpu.memory_space<vmem>>, vector<32x6xf32>
    %cst = arith.constant dense<0.000000e+00> : vector<8x6xf32>
    %2 = tpu.matmul %0, %1, %cst {dimension_numbers = #tpu.dot_dimension_numbers<[1], [0], [0], [1], [0, 0, 1, 1], [], []>} : vector<8x32xf32>, vector<32x6xf32>, vector<8x6xf32> -> vector<8x6xf32>
    %c0_3 = arith.constant 0 : index
    %c0_4 = arith.constant 0 : index
    %3 = vector.load %arg3[%c0_3, %c0_4] : memref<1x6xf32, #tpu.memory_space<vmem>>, vector<1x6xf32>
    %4 = vector.broadcast %3 : vector<1x6xf32> to vector<8x6xf32>
    %5 = arith.addf %2, %4 : vector<8x6xf32>
    %c0_5 = arith.constant 0 : index
    %c0_6 = arith.constant 0 : index
    %6 = vector.load %arg4[%c0_5, %c0_6] : memref<8x6xf32, #tpu.memory_space<vmem>>, vector<8x6xf32>
    tpu.vector_store %arg4[%c0_5, %c0_6], %5 {strides = array<i32>} : memref<8x6xf32, #tpu.memory_space<vmem>>, vector<8x6xf32>,
    return
  }
  func.func @transform_0(%arg0: i32) -> (i32, i32) {
    %c0_i32 = arith.constant 0 : i32
    %c0_i32_0 = arith.constant 0 : i32
    return %arg0, %c0_i32 : i32, i32
  }
  func.func @transform_1(%arg0: i32) -> (i32, i32) {
    %c0_i32 = arith.constant 0 : i32
    %c0_i32_0 = arith.constant 0 : i32
    %c0_i32_1 = arith.constant 0 : i32
    return %c0_i32, %c0_i32_0 : i32, i32
  }
  func.func @transform_2(%arg0: i32) -> (i32, i32) {
    %c0_i32 = arith.constant 0 : i32
    %c0_i32_0 = arith.constant 0 : i32
    %c0_i32_1 = arith.constant 0 : i32
    return %c0_i32, %c0_i32_0 : i32, i32
  }
  func.func @transform_3(%arg0: i32) -> (i32, i32) {
    %c0_i32 = arith.constant 0 : i32
    %c0_i32_0 = arith.constant 0 : i32
    return %arg0, %c0_i32 : i32, i32
  }
}

</mosaic_0001>

<bundles_post_ra>
// kernel: tpu_custom_call.1
= control target key start
LH: loop header
LB: loop body
LE: loop exit
PB: predicated region body
PF: predicated region fallthrough
CT: control target
= control target key end

     0   :  { %s137_s0 = inlined_call_operand.vmem [shape: f32[8,32], index: 0, kind: input, shape index: {}]   ;;  %s138_s1 = inlined_call_operand.vmem [shape: f32[32,6], index: 1, kind: input, shape index: {}]   ;;  %s139_s2 = inlined_call_operand.vmem [shape: f32[1,6], index: 2, kind: input, shape index: {}]   ;;  %s140_s3 = inlined_call_operand.hbm [shape: f32[8,6], index: 3, kind: output, shape index: {}]  }
   0x1   :  { %v19_v0 = vld [vmem:[%s138_s1 + $0x18] sm:$0xff]  ;;  %v18_v1 = vld [vmem:[%s138_s1 + $0x10] sm:$0xff]  ;;  %v17_v2 = vld [vmem:[%s138_s1 + $0x8] sm:$0xff] }
   0x2   :  { %40 = vmatpush.msra.mxu0 %v19_v0 }
   0x3   :  { %8 = vsyncpa [#allocation3], 0  ;;  %v16_v3 = vld [vmem:[%s138_s1] sm:$0xff]  ;;  %vm24_vm0 = vcmask 261120   ;;  %s95_s24 = smov [#allocation2]   ;;  %s57_s28 = sshll.u32 %s140_s3, 4  ;;  %s58_s28 = int_to_ptr.hbm [resolvable:$true] %s57_s28 }
   0x4   :  { %41 = vmatpush.msra.mxu0 %v18_v1  ;;  %v15_v4 = vld [vmem:[%s137_s0] sm:$0xff]  ;;  %s55_s25 = sshll.u32 %s95_s24, 4  ;;  %vm48_vm1 = vcmask 48128   ;;  %s56_s25 = int_to_ptr.vmem [resolvable:$true] %s55_s25 }
   0x5   :  { %v68_v5 = vld [vmem:[%s139_s2] ss:$0 sm:$0xff] }
   0x6   :  { %42 = vmatpush.msra.mxu0 %v17_v2 }
   0x8   :  { %43 = vmatpush.msra.mxu0 %v16_v3 }
   0x9   :  { %66 = vmatmul.msk.f32.vlgmr.msra.gmra.mxu0 %vm24_vm0, %v15_v4 }
  0x86   :  { %v45_v6 = vpop.f32.mrf.mxu0 }
  0x87   :  { %v46_v7 = vadd.f32 %v68_v5, %v45_v6 }
  0x89   :  { %49 = vst.msk [vmem:[#allocation2] sm:$0xff] %vm48_vm1, %v46_v7 }
  0x8a   :  { %60 = dma.vmem_to_hbm [thread:$0]  %s56_s25, 128, %s58_s28, [#allocation3]  }
  0x8b   :  { %93 = dma.done.wait [#allocation3], 128  }
  0x8c   :  { %94 = vsyncadd [#allocation3], 4294967168 }
  0x8d   :  { %65 = vsyncpa [#allocation3], 1 }

</bundles_post_ra>
